<compile_context>
chip_gen: v7x
topology: tpu7x:2x2x1
jax: 0.10.0
libtpu: 0.0.40
codegen_flags: <defaults>
</compile_context>

<pallas_src>
import functools

import jax
import jax.numpy as jnp
from jax import lax
from jax.experimental import pallas as pl
from jax.experimental.pallas import tpu as pltpu

_LANES = 128
_DEFAULT_MAX_SINGLE_TILE_ROWS = 4096   # 4096*128*4B = 2 MiB single tile
_DEFAULT_BLOCK_ROWS = 512              # 512*128*4B = 256 KiB per tile


def _round_up(x: int, m: int) -> int:
    return ((x + m - 1) // m) * m


def _single_tile_kernel(x_ref, o_ref, *, n, cardinality):
    """Whole-array kernel: one VMEM tile in, one SMEM scalar out."""
    rows, lanes = x_ref.shape
    row = lax.broadcasted_iota(jnp.int32, (rows, lanes), 0)
    col = lax.broadcasted_iota(jnp.int32, (rows, lanes), 1)
    idx = row * lanes + col

    x = x_ref[...]
    # Head region contributes +x; the very last real element contributes -x.
    # Padded lanes (idx >= n) are masked out by both conditions.
    head = jnp.where(idx < (n - cardinality), x, 0.0)
    last = jnp.where(idx == (n - 1), x, 0.0)
    o_ref[0] = 100.0 * jnp.sum(head - last)


def _tiled_kernel(x_ref, o_ref, acc_ref, *, n, cardinality, block_rows):
    """Large-N kernel: masked accumulate per tile, reduce once at the end.

    x_ref:   (block_rows, 128) VMEM tile of the zero-padded output slab.
    o_ref:   (1,) SMEM scalar output.
    acc_ref: (block_rows, 128) f32 VMEM accumulator (persists across grid).
    """
    i = pl.program_id(0)

    @pl.when(i == 0)
    def _():
        acc_ref[...] = jnp.zeros_like(acc_ref)

    row = lax.broadcasted_iota(jnp.int32, (block_rows, _LANES), 0)
    col = lax.broadcasted_iota(jnp.int32, (block_rows, _LANES), 1)
    idx = (i * block_rows + row) * _LANES + col

    x = x_ref[...]
    head = jnp.where(idx < (n - cardinality), x, 0.0)
    last = jnp.where(idx == (n - 1), x, 0.0)
    acc_ref[...] += head - last          # VALU-only per step, hidden under DMA

    @pl.when(i == pl.num_programs(0) - 1)
    def _():
        # Single cross-lane reduce + scalar store, once per kernel.
        o_ref[0] = 100.0 * jnp.sum(acc_ref[...])


def cardinality_loss(
    output: jax.Array,
    cardinality: int,
    *,
    max_single_tile_rows: int = _DEFAULT_MAX_SINGLE_TILE_ROWS,
    block_rows: int = _DEFAULT_BLOCK_ROWS,
) -> jax.Array:
    """Pallas implementation of CardinalityLoss.forward.

    Args:
      output: 1-D float array of length N.
      cardinality: number of trailing penalty-vector entries that are zero,
        except the very last which is -100.  Must satisfy 1 <= cardinality <= N
        (the original PyTorch module errors outside this range).
      max_single_tile_rows: internal knob — largest (rows, 128) slab handled as
        a single block.
      block_rows: internal knob — tile height for the large-N path.

    Returns:
      Scalar loss = dot(output, penalty_vec), computed in float32.
    """
    output = jnp.asarray(output, jnp.float32)
    n = output.shape[0]
    if not (1 <= cardinality <= n):
        raise ValueError(f"cardinality must be in [1, {n}], got {cardinality}")

    rows = pl.cdiv(n, _LANES)
    compiler_params = pltpu.CompilerParams(
        dimension_semantics=("arbitrary",),  # accumulator carried across grid
        vmem_limit_bytes=32 * 1024 * 1024,   # safe on v7x's smaller VMEM
    )

    if rows <= max_single_tile_rows:
        # Fast path: single full-array block, no scratch, no sublane padding.
        padded_len = rows * _LANES
        x = output if padded_len == n else jnp.pad(output, (0, padded_len - n))
        x2d = x.reshape(rows, _LANES)
        kernel = functools.partial(
            _single_tile_kernel, n=n, cardinality=cardinality
        )
        out = pl.pallas_call(
            kernel,
            out_shape=jax.ShapeDtypeStruct((1,), jnp.float32),
            grid=(1,),
            in_specs=[pl.BlockSpec((rows, _LANES), lambda i: (0, 0))],
            out_specs=pl.BlockSpec(memory_space=pltpu.SMEM),
            compiler_params=compiler_params,
        )(x2d)
        return out[0]

    # Large-N path: lane/sublane-dense slab tiled over a 1-D grid.
    block_rows = min(_round_up(block_rows, 8), _round_up(rows, 8))
    padded_rows = _round_up(rows, block_rows)
    padded_len = padded_rows * _LANES

    x = output if padded_len == n else jnp.pad(output, (0, padded_len - n))
    x2d = x.reshape(padded_rows, _LANES)

    kernel = functools.partial(
        _tiled_kernel, n=n, cardinality=cardinality, block_rows=block_rows
    )
    out = pl.pallas_call(
        kernel,
        out_shape=jax.ShapeDtypeStruct((1,), jnp.float32),
        grid=(padded_rows // block_rows,),
        in_specs=[pl.BlockSpec((block_rows, _LANES), lambda i: (i, 0))],
        out_specs=pl.BlockSpec(memory_space=pltpu.SMEM),
        scratch_shapes=[pltpu.VMEM((block_rows, _LANES), jnp.float32)],
        compiler_params=compiler_params,
    )(x2d)
    return out[0]


def _reference_loss(output: jax.Array, cardinality: int) -> jax.Array:
    n = output.shape[0]
    penalty_vec = jnp.concatenate(
        [
            jnp.full((n - cardinality,), 100.0, jnp.float32),
            jnp.zeros((cardinality,), jnp.float32).at[-1].set(-100.0),
        ]
    )
    return jnp.dot(jnp.asarray(output, jnp.float32), penalty_vec)


if __name__ == "__main__":
    key = jax.random.PRNGKey(0)
    k1, k2, k3 = jax.random.split(key, 3)

    # Case 1: the module's typical small use case (N = 128 portfolio weights).
    N1, CARD1 = 128, 16
    out1 = jax.random.normal(k1, (N1,), dtype=jnp.float32)
    loss1 = jax.block_until_ready(cardinality_loss(out1, CARD1))
    ref1 = _reference_loss(out1, CARD1)
    assert jnp.allclose(loss1, ref1, rtol=1e-5, atol=1e-2), (loss1, ref1)

    # Case 2: N not a multiple of 128 (exercises the lane-padding / mask path).
    N2, CARD2 = 200, 7
    out2 = jax.random.normal(k2, (N2,), dtype=jnp.float32)
    loss2 = jax.block_until_ready(cardinality_loss(out2, CARD2))
    ref2 = _reference_loss(out2, CARD2)
    assert jnp.allclose(loss2, ref2, rtol=1e-5, atol=1e-2), (loss2, ref2)

    # Case 3: force the multi-tile accumulator path (still a small shape).
    N3, CARD3 = 4096, 100
    out3 = jax.random.normal(k3, (N3,), dtype=jnp.float32)
    loss3 = jax.block_until_ready(
        cardinality_loss(out3, CARD3, max_single_tile_rows=0, block_rows=8)
    )
    ref3 = _reference_loss(out3, CARD3)
    assert jnp.allclose(loss3, ref3, rtol=1e-4, atol=1e-1), (loss3, ref3)

    print("KERNEL_OK")
</pallas_src>

<mosaic_0001>
module attributes {stable_mosaic.version = 11 : i64} {
  func.func @_single_tile_kernel(%arg0: i32, %arg1: memref<1x128xf32, #tpu.memory_space<vmem>>, %arg2: memref<1xf32, #tpu.memory_space<smem>>) attributes {dimension_semantics = [#tpu.dimension_semantics<arbitrary>], iteration_bounds = array<i64: 1>, scalar_prefetch = 0 : i64, scratch_operands = 0 : i64, tpu.core_type = #tpu.core_type<tc>, window_params = [{pipeline_mode = #tpu.pipeline_mode<synchronous>, transform_indices = @transform_0, window_bounds = array<i64: 1, 128>}, {transform_indices = @transform_1, window_bounds = array<i64: 1>}]} {
    %0 = tpu.iota {dimensions = array<i32: 0>} : vector<1x128xi32>
    %1 = tpu.iota {dimensions = array<i32: 1>} : vector<1x128xi32>
    %c128_i32 = arith.constant 128 : i32
    %2 = vector.broadcast %c128_i32 : i32 to vector<1x128xi32>
    %3 = arith.muli %0, %2 : vector<1x128xi32>
    %4 = arith.addi %3, %1 : vector<1x128xi32>
    %c0 = arith.constant 0 : index
    %c0_0 = arith.constant 0 : index
    %5 = vector.load %arg1[%c0, %c0_0] : memref<1x128xf32, #tpu.memory_space<vmem>>, vector<1x128xf32>
    %c112_i32 = arith.constant 112 : i32
    %6 = vector.broadcast %c112_i32 : i32 to vector<1x128xi32>
    %7 = arith.cmpi slt, %4, %6 : vector<1x128xi32>
    %cst = arith.constant 0.000000e+00 : f32
    %8 = vector.broadcast %cst : f32 to vector<1x128xf32>
    %9 = arith.select %7, %5, %8 : vector<1x128xi1>, vector<1x128xf32>
    %c127_i32 = arith.constant 127 : i32
    %10 = vector.broadcast %c127_i32 : i32 to vector<1x128xi32>
    %11 = arith.cmpi eq, %4, %10 : vector<1x128xi32>
    %cst_1 = arith.constant 0.000000e+00 : f32
    %12 = vector.broadcast %cst_1 : f32 to vector<1x128xf32>
    %13 = arith.select %11, %5, %12 : vector<1x128xi1>, vector<1x128xf32>
    %14 = arith.subf %9, %13 : vector<1x128xf32>
    %15 = vector.shape_cast %14 : vector<1x128xf32> to vector<1x1x128xf32>
    %cst_2 = arith.constant dense<0.000000e+00> : vector<1xf32>
    %16 = vector.multi_reduction <add>, %15, %cst_2 [1, 2] : vector<1x1x128xf32> to vector<1xf32>
    %17 = vector.shape_cast %16 : vector<1xf32> to vector<1x1x1xf32>
    %18 = vector.extract %17[0, 0, 0] : f32 from vector<1x1x1xf32>
    %cst_3 = arith.constant 1.000000e+02 : f32
    %19 = arith.mulf %cst_3, %18 : f32
    %c0_4 = arith.constant 0 : index
    %20 = memref.load %arg2[%c0_4] : memref<1xf32, #tpu.memory_space<smem>>
    memref.store %19, %arg2[%c0_4] : memref<1xf32, #tpu.memory_space<smem>>
    return
  }
  func.func @transform_0(%arg0: i32) -> (i32, i32) {
    %c0_i32 = arith.constant 0 : i32
    %c0_i32_0 = arith.constant 0 : i32
    %c0_i32_1 = arith.constant 0 : i32
    return %c0_i32, %c0_i32_0 : i32, i32
  }
  func.func @transform_1(%arg0: i32) -> i32 {
    %c0_i32 = arith.constant 0 : i32
    %c0_i32_0 = arith.constant 0 : i32
    return %c0_i32 : i32
  }
}

</mosaic_0001>

<bundles_post_ra>
// kernel: tpu_custom_call.1
= control target key start
LH: loop header
LB: loop body
LE: loop exit
PB: predicated region body
PF: predicated region fallthrough
CT: control target
= control target key end

     0   :  { %6 = vsyncpa [#allocation3], 0  ;;  %s137_s0 = inlined_call_operand.hbm [shape: f32[1,128], index: 0, kind: input, shape index: {}]   ;;  %s138_s1 = inlined_call_operand.hbm [shape: f32[1], index: 1, kind: output, shape index: {}]  }
   0x1   :  { %7 = vsyncpa [#allocation4], 0  ;;  %s101_s6 = smov [#allocation2]   ;;  %s65_s10 = scalar_lea.hbm %s137_s0, 16 }
   0x2   :  { %s14_s7 = sshll.u32 %s101_s6, 4  ;;  %p66_p0 = scmp.ne.s32.totalorder %s137_s0, %s65_s10  ;;  %s15_s7 = int_to_ptr.vmem [resolvable:$true] %s14_s7 }
   0x3   :  { %p69_p1 = scmp.lt.u32.totalorder %s65_s10, %s137_s0 }
   0x5   :  { %p71_p2 = pnand %p69_p1, %p66_p0 }
   0x7   :  { %74 = shalt.err (!%p71_p2)
}
   0x8   :  { %s75_s15 = scalar_lea.vmem %s15_s7, 16  ;;  %s79_s16 = scalar_lea.vmem %s15_s7, 32 }
   0x9   :  { %p76_p3 = scmp.ne.s32.totalorder %s15_s7, %s75_s15  ;;  %p80_p4 = scmp.lt.s32.totalorder %s15_s7, %s15_s7 }
   0xa   :  { %p81_p5 = scmp.lt.s32.totalorder %s79_s16, %s75_s15 }
   0xc   :  { %p82_p6 = por %p81_p5, %p80_p4 }
   0xe   :  { %p83_p7 = pnand %p82_p6, %p76_p3 }
  0x10   :  { %86 = shalt.err (!%p83_p7)
}
  0x11   :  { %17 = dma.hbm_to_vmem [thread:$0]  %s137_s0, 16, %s15_s7, [#allocation3]  }
  0x12   :  { %97 = dma.done.wait [#allocation3], 16  }
  0x13   :  { %98 = vsyncadd [#allocation3], 4294967280  ;;  %v21_v0 = vlaneseq  ;;  %v27_v5 = vld [vmem:[#allocation2] sm:$0x1]  ;;  %vm33_vm2 = vcmask 1040384   ;;  %s87_s22 = scalar_lea.hbm %s138_s1, 16 }
  0x14   :  { %p88_p8 = scmp.ne.s32.totalorder %s138_s1, %s87_s22  ;;  %p91_p9 = scmp.lt.u32.totalorder %s87_s22, %s138_s1 }
  0x15   :  { %v22_v1 = vshrl.u32 %v21_v0, 7  ;;  %v24_v2 = vand.u32 127, %v21_v0 }
  0x16   :  { %p93_p10 = pnand %p91_p9, %p88_p8 }
  0x17   :  { %v25_v3 = vmul.u32 128, %v22_v1 }
  0x19   :  { %v26_v4 = vadd.s32 %v25_v3, %v24_v2 }
  0x1b   :  { %vm28_vm0 = vcmp.lt.s32.totalorder %v26_v4, 112  ;;  %vm30_vm1 = vcmp.eq.s32.totalorder %v26_v4, 127 }
  0x1c   :  { %v29_v6 = vsel %vm28_vm0, %v27_v5, 0.0  ;;  %v31_v7 = vsel %vm30_vm1, %v27_v5, 0.0 }
  0x1d   :  { %v32_v8 = vsub.f32 %v29_v6, %v31_v7 }
  0x1f   :  { %v34_v9 = vsel %vm33_vm2, %v32_v8, 0.0 }
  0x20   :  { %35 = vadd.xlane.f32.xlu0 %v34_v9 }
  0xad   :  { %v36_v10 = vpop.xlane.xlu0 %35 }
  0xae   :  { %v37_v11 = vrot.slane %v36_v10, 4 }
  0xb0   :  { %v38_v12 = vadd.f32 %v37_v11, %v36_v10 }
  0xb2   :  { %v39_v13 = vrot.slane %v38_v12, 2 }
  0xb4   :  { %v40_v14 = vadd.f32 %v39_v13, %v38_v12 }
  0xb6   :  { %v41_v15 = vrot.slane %v40_v14, 1 }
  0xb8   :  { %v42_v16 = vadd.f32 %v41_v15, %v40_v14 }
  0xba   :  { %61 = vpush %v42_v16 }
  0xeb   :  { %s62_s0 = spop %61 }
  0xec   :  { %s44_s19 = smul.f32 100.0, %s62_s0 }
  0xee   :  { %46 = sst [smem:[#allocation5]] %s44_s19 }
  0xef   :  { %96 = shalt.err (!%p93_p10)
}
  0xf0   :  { %s102_s27 = smov [#allocation5]  }
  0xf1   :  { %54 = dma.smem_to_hbm %s102_s27, 16, %s138_s1, [#allocation4]  }
  0xf2   :  { %99 = dma.done.wait [#allocation4], 16  }
  0xf3   :  { %100 = vsyncadd [#allocation4], 4294967280 }
  0xf4   :  { %58 = sfence }
  0xf5   :  { %59 = vsyncpa [#allocation3], 1 }
  0xf6   :  { %60 = vsyncpa [#allocation4], 1 }

</bundles_post_ra>
